<compile_context>
chip_gen: v6e
topology: v6e:2x2x1
jax: 0.10.0
libtpu: 0.0.40
codegen_flags: <defaults>
</compile_context>

<pallas_src>
import jax
import jax.numpy as jnp
from jax import lax
from jax.experimental import pallas as pl
from jax.experimental.pallas import tpu as pltpu

WEIGHT_DTYPE = jnp.bfloat16


def _round_up(x, m):
    return (x + m - 1) // m * m


def _pick_row_tile(m, t_max):
    """Row tile: multiple of 8, <= t_max; when the padded row count allows,
    chosen so the grid has >=2 steps so dimension_semantics=('parallel',) can
    shard across v7x's two TensorCores."""
    m8 = _round_up(max(int(m), 1), 8)
    if m8 <= 8:
        return 8
    n_steps = max(2, -(-m8 // t_max))
    return max(8, min(t_max, _round_up(-(-m8 // n_steps), 8)))


def _vmem_limit(block_bytes):
    # double-buffered blocks + headroom for in-kernel intermediates, clamped to
    # the v7x-safe [32 MiB, 64 MiB] window.
    est = 2 * block_bytes + (8 << 20)
    return int(min(max(est, 32 << 20), 64 << 20))


# ----------------------------------------------------------------------------
# Fused Pallas kernels
# ----------------------------------------------------------------------------
def _make_fused_mlp_kernel(n_layers):
    def kernel(*refs):
        x_ref = refs[0]
        o_ref = refs[-1]
        wb = refs[1:-1]
        h = x_ref[...]                                      # f32
        for i in range(n_layers):
            w = wb[2 * i][...]                              # bf16, VMEM-resident
            b = wb[2 * i + 1][...]                          # f32 (1, N)
            h = jnp.dot(h.astype(w.dtype), w,
                        preferred_element_type=jnp.float32) + b
            if i < n_layers - 1:
                h = jnp.maximum(h, 0.0)
        o_ref[...] = h.astype(o_ref.dtype)
    return kernel


def fused_mlp(x, layers, *, tm_max=256):
    """One pallas_call for a whole Linear(+ReLU)* chain.  x:(M, K) with K equal
    to the pre-padded row count of layers[0]; the output width is the
    pre-padded (multiple of 128, lane-dense) column count of the last layer."""
    M, K = x.shape
    assert K == layers[0][0].shape[0]
    n_pad = layers[-1][0].shape[1]
    out_dtype = x.dtype

    tm = _pick_row_tile(M, tm_max)
    m_pad = _round_up(M, tm)
    if m_pad != M:
        x = jnp.pad(x, ((0, m_pad - M), (0, 0)))

    in_specs = [pl.BlockSpec((tm, K), lambda i: (i, 0))]
    args = [x]
    blk_bytes = tm * K * x.dtype.itemsize + tm * n_pad * jnp.dtype(out_dtype).itemsize
    for (w, b) in layers:
        in_specs.append(pl.BlockSpec(w.shape, lambda i: (0, 0)))
        in_specs.append(pl.BlockSpec(b.shape, lambda i: (0, 0)))
        args.extend([w, b])
        blk_bytes += w.size * w.dtype.itemsize + b.size * b.dtype.itemsize

    out = pl.pallas_call(
        _make_fused_mlp_kernel(len(layers)),
        out_shape=jax.ShapeDtypeStruct((m_pad, n_pad), out_dtype),
        grid=(m_pad // tm,),
        in_specs=in_specs,
        out_specs=pl.BlockSpec((tm, n_pad), lambda i: (i, 0)),
        compiler_params=pltpu.CompilerParams(
            dimension_semantics=("parallel",),
            vmem_limit_bytes=_vmem_limit(blk_bytes)),
    )(*args)
    return out[:M] if m_pad != M else out


def _make_meanpool_bank_kernel(n_branches, n_phis, set_sizes, tb):
    def kernel(*refs):
        xs = refs[:n_branches]
        outs = refs[len(refs) - n_branches:]
        wb = refs[n_branches:len(refs) - n_branches]
        idx = 0
        for bi in range(n_branches):
            s = set_sizes[bi]
            h = xs[bi][...]                                  # (tb*s, f_pad) f32
            for _ in range(n_phis[bi]):
                w = wb[idx][...]
                b = wb[idx + 1][...]
                idx += 2
                h = jnp.maximum(
                    jnp.dot(h.astype(w.dtype), w,
                            preferred_element_type=jnp.float32) + b, 0.0)
            # Mean over the set: pooling matrix built in-kernel from iota
            # (no HBM DMA / extra VMEM buffer for it).
            row_b = lax.broadcasted_iota(jnp.int32, (tb, tb * s), 0)
            col_r = lax.broadcasted_iota(jnp.int32, (tb, tb * s), 1)
            lo = row_b * s
            pool = jnp.where((col_r >= lo) & (col_r < lo + s),
                             jnp.float32(1.0 / s), jnp.float32(0.0))
            pooled = jnp.dot(pool, h, preferred_element_type=jnp.float32)
            w = wb[idx][...]
            b = wb[idx + 1][...]
            idx += 2
            out = jnp.dot(pooled.astype(w.dtype), w,
                          preferred_element_type=jnp.float32) + b
            outs[bi][...] = out.astype(outs[bi].dtype)
    return kernel


def fused_mean_pool_bank(xs, branch_params, *, tb_max=32):
    """All MeanPoolSet branches (per-element phi chain -> mean over set -> rho)
    evaluated in ONE pallas_call over a shared batch-tile grid.
    xs[i]: (B, S_i, F_i).  Returns a list of (B, n_pad_i) arrays."""
    B = xs[0].shape[0]
    assert all(x.shape[0] == B for x in xs)
    out_dtype = xs[0].dtype
    tb = _pick_row_tile(B, tb_max)
    b_pad = _round_up(B, tb)

    in_specs, args = [], []
    set_sizes, n_phis = [], []
    blk_bytes = 0
    for x, prm in zip(xs, branch_params):
        _, S, F = x.shape
        f_pad = prm["phi"][0][0].shape[0]
        if F != f_pad:
            x = jnp.pad(x, ((0, 0), (0, 0), (0, f_pad - F)))
        if b_pad != B:
            x = jnp.pad(x, ((0, b_pad - B), (0, 0), (0, 0)))
        x2 = x.reshape(b_pad * S, f_pad)
        rows = tb * S
        in_specs.append(pl.BlockSpec((rows, f_pad), lambda i: (i, 0)))
        args.append(x2)
        set_sizes.append(S)
        blk_bytes += rows * f_pad * x2.dtype.itemsize
    for prm in branch_params:
        n_phis.append(len(prm["phi"]))
        for (w, b) in list(prm["phi"]) + [prm["rho"]]:
            in_specs.append(pl.BlockSpec(w.shape, lambda i: (0, 0)))
            in_specs.append(pl.BlockSpec(b.shape, lambda i: (0, 0)))
            args.extend([w, b])
            blk_bytes += w.size * w.dtype.itemsize + b.size * b.dtype.itemsize
    out_shapes, out_specs = [], []
    for prm in branch_params:
        n_pad = prm["rho"][0].shape[1]
        out_shapes.append(jax.ShapeDtypeStruct((b_pad, n_pad), out_dtype))
        out_specs.append(pl.BlockSpec((tb, n_pad), lambda i: (i, 0)))
        blk_bytes += tb * n_pad * jnp.dtype(out_dtype).itemsize

    outs = pl.pallas_call(
        _make_meanpool_bank_kernel(len(xs), tuple(n_phis), tuple(set_sizes), tb),
        out_shape=tuple(out_shapes),
        grid=(b_pad // tb,),
        in_specs=in_specs,
        out_specs=tuple(out_specs),
        compiler_params=pltpu.CompilerParams(
            dimension_semantics=("parallel",),
            vmem_limit_bytes=_vmem_limit(blk_bytes)),
    )(*args)
    if not isinstance(outs, (list, tuple)):
        outs = (outs,)
    return [o[:B] if b_pad != B else o for o in outs]


# ----------------------------------------------------------------------------
# Parameter initialization (deterministic synthetic weights; pre-padded/packed)
# ----------------------------------------------------------------------------
def _init_linear(key, fin, fout, scale=0.05):
    k1, k2 = jax.random.split(key)
    w = jax.random.normal(k1, (fin, fout), jnp.float32) * scale
    b = jax.random.normal(k2, (fout,), jnp.float32) * scale
    return w, b


def init_mlp_bank(key, branch_defs, dim_hidden, depth):
    """Pack every Time_Step_Mlp branch into ONE fused MLP.
    Branches sharing a 'group' consume the same input tensor: their layer-0
    weights are stacked along the output axis; deeper layers are block-diagonal
    (per-branch hidden slots padded to 128 lanes); the final layer maps each
    branch to its own 128-padded output slab."""
    if not branch_defs:
        return None
    assert depth >= 1
    n_layers = depth + 1
    h_pad = _round_up(dim_hidden, 128)

    groups, gmap, k_off = [], {}, 0
    for bd in branch_defs:
        g = bd["group"]
        if g not in gmap:
            k_pad = _round_up(bd["in_feature"], 128)
            gmap[g] = (bd["in_feature"], k_off, k_pad)
            groups.append((g, bd["in_feature"], k_off, k_pad))
            k_off += k_pad
        else:
            assert gmap[g][0] == bd["in_feature"]
    k0_total = k_off

    nb = len(branch_defs)
    hid_total = nb * h_pad

    branches, n_off = [], 0
    for bd in branch_defs:
        branches.append(dict(name=bd["name"], out_offset=n_off,
                             time_step=bd["time_step"],
                             out_feature=bd["out_feature"]))
        n_off += _round_up(bd["time_step"] * bd["out_feature"], 128)
    n_total = n_off

    shapes = ([(k0_total, hid_total)]
              + [(hid_total, hid_total)] * (depth - 1)
              + [(hid_total, n_total)])
    Ws = [jnp.zeros(s, jnp.float32) for s in shapes]
    Bs = [jnp.zeros((1, s[1]), jnp.float32) for s in shapes]
    ref = {}

    for bi, bd in enumerate(branch_defs):
        fin = bd["in_feature"]
        sizes = [fin] + [dim_hidden] * depth + [bd["time_step"] * bd["out_feature"]]
        _, g_koff, _ = gmap[bd["group"]]
        h_off = bi * h_pad
        ref_layers = []
        for li in range(n_layers):
            a, c = sizes[li], sizes[li + 1]
            key, sub = jax.random.split(key)
            w, b = _init_linear(sub, a, c)
            ref_layers.append((w, b))
            r0 = g_koff if li == 0 else h_off
            c0 = branches[bi]["out_offset"] if li == n_layers - 1 else h_off
            Ws[li] = Ws[li].at[r0:r0 + a, c0:c0 + c].set(w)
            Bs[li] = Bs[li].at[0, c0:c0 + c].set(b)
        ref[bd["name"]] = ref_layers

    layers = [(w.astype(WEIGHT_DTYPE), b) for w, b in zip(Ws, Bs)]
    return dict(layers=layers, groups=groups, branches=branches, ref=ref)


def apply_mlp_bank(bank, group_inputs, *, tm_max=256):
    """Run every packed Time_Step_Mlp branch in one fused pallas_call."""
    B = next(iter(group_inputs.values())).shape[0]
    cols = []
    for (g, fin, _koff, kpad) in bank["groups"]:
        xg = group_inputs[g]
        assert xg.shape == (B, fin)
        cols.append(jnp.pad(xg, ((0, 0), (0, kpad - fin))) if kpad != fin else xg)
    x = cols[0] if len(cols) == 1 else jnp.concatenate(cols, axis=1)
    out = fused_mlp(x, bank["layers"], tm_max=tm_max)          # (B, n_total)
    res = {}
    for br in bank["branches"]:
        n_out = br["time_step"] * br["out_feature"]
        off = br["out_offset"]
        res[br["name"]] = out[:, off:off + n_out].reshape(
            B, br["time_step"], br["out_feature"])
    return res


def init_mean_pool_set(key, dim_input, dim_hidden, depth, dim_output, num_outputs):
    f_pad = _round_up(dim_input, 128)
    h_pad = _round_up(dim_hidden, 128)
    sizes = [dim_input] + [dim_hidden] * depth
    pads = [f_pad] + [h_pad] * depth
    phi, ref_phi = [], []
    for (a, c, ap, cp) in zip(sizes[:-1], sizes[1:], pads[:-1], pads[1:]):
        key, sub = jax.random.split(key)
        w, b = _init_linear(sub, a, c)
        ref_phi.append((w, b))
        phi.append((jnp.pad(w, ((0, ap - a), (0, cp - c))).astype(WEIGHT_DTYPE),
                    jnp.pad(b, (0, cp - c)).reshape(1, cp)))
    n_out = num_outputs * dim_output
    n_pad = _round_up(n_out, 128)
    key, sub = jax.random.split(key)
    w, b = _init_linear(sub, dim_hidden, n_out)
    rho = (jnp.pad(w, ((0, h_pad - dim_hidden), (0, n_pad - n_out))).astype(WEIGHT_DTYPE),
           jnp.pad(b, (0, n_pad - n_out)).reshape(1, n_pad))
    return dict(phi=phi, rho=rho, ref_phi=ref_phi, ref_rho=(w, b),
                num_outputs=num_outputs, dim_output=dim_output)


# ----------------------------------------------------------------------------
# The layer
# ----------------------------------------------------------------------------
class ErrorCorrectionEncodedParamLayer:
    def __init__(self, key, glob_param_size, imp_param_size, hyb_param_size,
                 dim_val, src_len, rf_tgt_len, cat2pe, cat2kv,
                 cat2kv_hyb_pool="cat", depth=2,
                 glob_param_outsize=16, imp_param_outsize=16,
                 hyb_param_outsize=32, src_hyb_param_outsize=32,
                 sep_glob_layer=True, sep_imp_layer=True, sep_hyb_layer=True):
        self.cat2pe = cat2pe
        self.cat2kv = cat2kv
        assert len(set([self.cat2kv, self.cat2pe])) == 2, "must one True and another one False."
        self.glob_param_outsize = glob_param_outsize
        self.imp_param_outsize = imp_param_outsize
        self.hyb_param_outsize = hyb_param_outsize
        self.src_hyb_param_outsize = src_hyb_param_outsize
        self.src_len = src_len
        self.rf_tgt_len = rf_tgt_len

        if self.cat2pe:
            self.model_out_size = glob_param_outsize + imp_param_outsize + hyb_param_outsize
        elif self.cat2kv:
            self.model_out_size = glob_param_outsize + imp_param_outsize + hyb_param_outsize
            assert sep_glob_layer is False
            assert sep_imp_layer is False
            self.rf_tgt_len, rf_tgt_len = (src_len, src_len)
            self.cat2kv_hyb_pool = cat2kv_hyb_pool
            assert cat2kv_hyb_pool in ["cat", "minus", "plus", "add", "+", "-", "subtraction", "mean"]
            if cat2kv_hyb_pool == "cat":
                self.model_out_size += src_hyb_param_outsize
            else:
                assert src_hyb_param_outsize == hyb_param_outsize
        if self.model_out_size == 0:
            raise ValueError("params encoder should have non zero out dim")

        # ----- packed MLP bank: every Time_Step_Mlp branch in ONE pallas_call -----
        branch_defs = []
        if glob_param_outsize != 0:
            branch_defs.append(dict(name="src_glob", group="glob",
                                    in_feature=glob_param_size,
                                    out_feature=glob_param_outsize,
                                    time_step=src_len))
            if self.cat2pe and sep_glob_layer:
                branch_defs.append(dict(name="tgt_glob", group="glob",
                                        in_feature=glob_param_size,
                                        out_feature=glob_param_outsize,
                                        time_step=rf_tgt_len))
        if imp_param_outsize != 0:
            branch_defs.append(dict(name="src_imp", group="imp",
                                    in_feature=imp_param_size,
                                    out_feature=imp_param_outsize,
                                    time_step=src_len))
            if self.cat2pe and sep_imp_layer:
                branch_defs.append(dict(name="tgt_imp", group="imp",
                                        in_feature=imp_param_size,
                                        out_feature=imp_param_outsize,
                                        time_step=rf_tgt_len))
        keys = jax.random.split(key, 4)
        self.mlp_bank = init_mlp_bank(keys[0], branch_defs, dim_val, depth)
        self.ref_mlp_layers = self.mlp_bank["ref"] if self.mlp_bank is not None else {}

        # ----- hyb (MeanPoolSet path; hyb_use_transformer=False) -----
        # TODO(synk): SetTransformer branch (hyb_use_transformer=True) not implemented.
        hyb_rf_tgt_len = rf_tgt_len if sep_hyb_layer else src_len
        self.src_hyb = None
        self.rf_tgt_hyb = None
        if hyb_param_outsize != 0:
            self.rf_tgt_hyb = init_mean_pool_set(keys[1], hyb_param_size, dim_val,
                                                 depth, hyb_param_outsize, hyb_rf_tgt_len)
        if src_hyb_param_outsize != 0:
            if sep_hyb_layer:
                self.src_hyb = init_mean_pool_set(keys[2], hyb_param_size, dim_val,
                                                  depth, src_hyb_param_outsize, src_len)
            else:
                assert src_hyb_param_outsize == hyb_param_outsize
                self.src_hyb = self.rf_tgt_hyb

    # ------------------------------------------------------------------
    @staticmethod
    def _none_include_cat(*args, axis=2):
        out = None
        for item in args:
            if item is not None:
                out = item if out is None else jnp.concatenate((out, item), axis=axis)
        return out

    def _mlp_group_inputs(self, glob_param, imp_param):
        gi = {}
        if self.mlp_bank is None:
            return gi
        for (g, _fin, _koff, _kpad) in self.mlp_bank["groups"]:
            if g == "glob":
                gi["glob"] = glob_param
            elif g == "imp":
                b, t, f = imp_param.shape
                assert t == 1, "ts should be one for imp param"
                gi["imp"] = imp_param.reshape(b, f)
        return gi

    def _encode_hyb(self, hyb_param, src_hyb_param):
        """Both MeanPoolSet branches in ONE fused pallas_call.  The mean over
        num_src commutes through the affine rho (eval mode, equal set sizes),
        so src pooling happens once over num_src*set_size elements."""
        xs, params, names = [], [], []
        if self.src_hyb is not None:
            b, num_src, d, f = src_hyb_param.shape
            xs.append(src_hyb_param.reshape(b, num_src * d, f))
            params.append(self.src_hyb)
            names.append("src")
        if self.rf_tgt_hyb is not None:
            b, n, ts, f = hyb_param.shape
            assert n == 1
            xs.append(hyb_param.reshape(b, ts, f))
            params.append(self.rf_tgt_hyb)
            names.append("tgt")
        if not xs:
            return None, None
        outs = fused_mean_pool_bank(xs, params)
        res = {}
        for name, o, prm in zip(names, outs, params):
            n_out = prm["num_outputs"] * prm["dim_output"]
            res[name] = o[:, :n_out].reshape(o.shape[0], prm["num_outputs"],
                                             prm["dim_output"])
        return res.get("src"), res.get("tgt")

    # ------------------------------------------------------------------
    def __call__(self, glob_param, imp_param, hyb_param, src_hyb_param):
        if self.cat2pe:
            return self.forward_cat2pe(glob_param, imp_param, hyb_param, src_hyb_param)
        return self.forward_cat2kv(glob_param, imp_param, hyb_param, src_hyb_param)

    def forward_cat2kv(self, glob_param, imp_param, hyb_param, src_hyb_param):
        enc = (apply_mlp_bank(self.mlp_bank,
                              self._mlp_group_inputs(glob_param, imp_param))
               if self.mlp_bank is not None else {})
        src_glob = enc.get("src_glob")
        src_imp = enc.get("src_imp")

        merged_hyb = None
        if self.src_hyb is not None or self.rf_tgt_hyb is not None:
            src_h, tgt_h = self._encode_hyb(hyb_param, src_hyb_param)
            if tgt_h is not None:
                tgt_h = tgt_h.reshape(tgt_h.shape[0], self.rf_tgt_len,
                                      self.hyb_param_outsize)
            if self.cat2kv_hyb_pool == "cat":
                merged_hyb = self._none_include_cat(src_h, tgt_h, axis=2)
            elif self.cat2kv_hyb_pool in ["minus", "-", "subtraction"]:
                merged_hyb = tgt_h - src_h
            elif self.cat2kv_hyb_pool in ["add", "plus", "+"]:
                merged_hyb = tgt_h + src_h
            elif self.cat2kv_hyb_pool == "mean":
                merged_hyb = (tgt_h + src_h) / 2.0
            else:
                raise ValueError("no such cat2kv_hyb_pool method")

        src_encoded = self._none_include_cat(src_glob, src_imp, merged_hyb)
        _, t, d = src_encoded.shape
        assert d == self.model_out_size and t == self.src_len
        return src_encoded

    def forward_cat2pe(self, glob_param, imp_param, hyb_param, src_hyb_param):
        enc = (apply_mlp_bank(self.mlp_bank,
                              self._mlp_group_inputs(glob_param, imp_param))
               if self.mlp_bank is not None else {})
        src_glob, tgt_glob = enc.get("src_glob"), enc.get("tgt_glob")
        if src_glob is not None and tgt_glob is None:
            assert self.src_len == self.rf_tgt_len + 1, \
                "sep_glob_layer=False requires src_len == rf_tgt_len + 1"
            tgt_glob = src_glob[:, 1:]
        src_imp, tgt_imp = enc.get("src_imp"), enc.get("tgt_imp")
        if src_imp is not None and tgt_imp is None:
            assert self.src_len == self.rf_tgt_len + 1, \
                "sep_imp_layer=False requires src_len == rf_tgt_len + 1"
            tgt_imp = src_imp[:, 1:]

        src_h, tgt_h = self._encode_hyb(hyb_param, src_hyb_param)
        if tgt_h is not None:
            b, ts, _f = tgt_h.shape
            if ts == self.rf_tgt_len:
                pass
            elif ts - 1 == self.rf_tgt_len:
                tgt_h = tgt_h[:, 1:]
            else:
                raise ValueError("dimension wrong")
            tgt_h = tgt_h.reshape(b, self.rf_tgt_len, self.hyb_param_outsize)

        src_encoded = self._none_include_cat(src_glob, src_imp, src_h)
        tgt_encoded = self._none_include_cat(tgt_glob, tgt_imp, tgt_h)
        _, t, d = src_encoded.shape
        assert d == self.model_out_size and t == self.src_len
        _, t, d = tgt_encoded.shape
        assert d == self.model_out_size and t == self.rf_tgt_len
        return src_encoded, tgt_encoded


# ----------------------------------------------------------------------------
# Pure-JAX f32 reference (PyTorch-literal), used only for the self-check below.
# ----------------------------------------------------------------------------
def _ref_mlp_chain(x, layers):
    h = x
    for i, (w, b) in enumerate(layers):
        h = h @ w + b
        if i < len(layers) - 1:
            h = jnp.maximum(h, 0.0)
    return h


def _ref_mean_pool_set(x, prm):
    h = x
    for (w, b) in prm["ref_phi"]:
        h = jnp.maximum(h @ w + b, 0.0)
    pooled = jnp.mean(h, axis=1)
    w, b = prm["ref_rho"]
    out = pooled @ w + b
    return out.reshape(x.shape[0], prm["num_outputs"], prm["dim_output"])


def reference_forward(layer, glob_param, imp_param, hyb_param, src_hyb_param):
    b = glob_param.shape[0]

    def tsmlp(name, x, ts, of):
        return _ref_mlp_chain(x, layer.ref_mlp_layers[name]).reshape(b, ts, of)

    imp2d = imp_param.reshape(b, -1)
    src_glob = tgt_glob = None
    if "src_glob" in layer.ref_mlp_layers:
        src_glob = tsmlp("src_glob", glob_param, layer.src_len, layer.glob_param_outsize)
        if layer.cat2pe:
            tgt_glob = (tsmlp("tgt_glob", glob_param, layer.rf_tgt_len, layer.glob_param_outsize)
                        if "tgt_glob" in layer.ref_mlp_layers else src_glob[:, 1:])
    src_imp = tgt_imp = None
    if "src_imp" in layer.ref_mlp_layers:
        src_imp = tsmlp("src_imp", imp2d, layer.src_len, layer.imp_param_outsize)
        if layer.cat2pe:
            tgt_imp = (tsmlp("tgt_imp", imp2d, layer.rf_tgt_len, layer.imp_param_outsize)
                       if "tgt_imp" in layer.ref_mlp_layers else src_imp[:, 1:])
    src_h = None
    if layer.src_hyb is not None:
        _, num_src, d, f = src_hyb_param.shape
        enc = _ref_mean_pool_set(src_hyb_param.reshape(b * num_src, d, f), layer.src_hyb)
        enc = enc.reshape(b, num_src, layer.src_len, layer.src_hyb_param_outsize)
        src_h = jnp.mean(enc, axis=1)
    tgt_h = None
    if layer.rf_tgt_hyb is not None:
        _, _n, ts, f = hyb_param.shape
        tgt_h = _ref_mean_pool_set(hyb_param.reshape(b, ts, f), layer.rf_tgt_hyb)

    cat = ErrorCorrectionEncodedParamLayer._none_include_cat
    if layer.cat2kv:
        tgt_h_kv = (tgt_h.reshape(b, layer.rf_tgt_len, layer.hyb_param_outsize)
                    if tgt_h is not None else None)
        if layer.cat2kv_hyb_pool == "cat":
            merged = cat(src_h, tgt_h_kv, axis=2)
        elif layer.cat2kv_hyb_pool in ["minus", "-", "subtraction"]:
            merged = tgt_h_kv - src_h
        elif layer.cat2kv_hyb_pool in ["add", "plus", "+"]:
            merged = tgt_h_kv + src_h
        else:
            merged = (tgt_h_kv + src_h) / 2.0
        return cat(src_glob, src_imp, merged)
    if tgt_h is not None and tgt_h.shape[1] - 1 == layer.rf_tgt_len:
        tgt_h = tgt_h[:, 1:]
    return cat(src_glob, src_imp, src_h), cat(tgt_glob, tgt_imp, tgt_h)


# ----------------------------------------------------------------------------
if __name__ == "__main__":
    key = jax.random.PRNGKey(0)
    k_params, k_params2, kg, ki, kh, ksh = jax.random.split(key, 6)

    # small shapes
    b = 2
    glob_param_size, imp_param_size, hyb_param_size = 6, 5, 4
    dim_val, depth = 32, 2
    src_len, rf_tgt_len = 8, 7
    num_src, set_size = 3, 10

    glob_param = jax.random.normal(kg, (b, glob_param_size), jnp.float32)
    imp_param = jax.random.normal(ki, (b, 1, imp_param_size), jnp.float32)
    hyb_param = jax.random.normal(kh, (b, 1, set_size, hyb_param_size), jnp.float32)
    src_hyb_param = jax.random.normal(ksh, (b, num_src, set_size, hyb_param_size), jnp.float32)

    # --- cat2kv configuration (single output) ---
    layer_kv = ErrorCorrectionEncodedParamLayer(
        k_params, glob_param_size, imp_param_size, hyb_param_size, dim_val,
        src_len, rf_tgt_len, cat2pe=False, cat2kv=True, cat2kv_hyb_pool="cat",
        depth=depth, glob_param_outsize=16, imp_param_outsize=16,
        hyb_param_outsize=32, src_hyb_param_outsize=32,
        sep_glob_layer=False, sep_imp_layer=False, sep_hyb_layer=True)
    out_kv = jax.block_until_ready(layer_kv(glob_param, imp_param, hyb_param, src_hyb_param))
    assert out_kv.shape == (b, src_len, 16 + 16 + 32 + 32)
    ref_kv = reference_forward(layer_kv, glob_param, imp_param, hyb_param, src_hyb_param)
    assert bool(jnp.allclose(out_kv, ref_kv, rtol=0.1, atol=1e-2)), "cat2kv mismatch vs reference"

    # --- cat2pe configuration (src + rf_tgt outputs) ---
    layer_pe = ErrorCorrectionEncodedParamLayer(
        k_params2, glob_param_size, imp_param_size, hyb_param_size, dim_val,
        src_len, rf_tgt_len, cat2pe=True, cat2kv=False,
        depth=depth, glob_param_outsize=16, imp_param_outsize=16,
        hyb_param_outsize=32, src_hyb_param_outsize=32,
        sep_glob_layer=True, sep_imp_layer=True, sep_hyb_layer=True)
    out_src, out_tgt = layer_pe(glob_param, imp_param, hyb_param, src_hyb_param)
    out_src = jax.block_until_ready(out_src)
    out_tgt = jax.block_until_ready(out_tgt)
    assert out_src.shape == (b, src_len, 64)
    assert out_tgt.shape == (b, rf_tgt_len, 64)
    ref_src, ref_tgt = reference_forward(layer_pe, glob_param, imp_param, hyb_param, src_hyb_param)
    assert bool(jnp.allclose(out_src, ref_src, rtol=0.1, atol=1e-2)), "cat2pe src mismatch"
    assert bool(jnp.allclose(out_tgt, ref_tgt, rtol=0.1, atol=1e-2)), "cat2pe tgt mismatch"

    print("KERNEL_OK")
</pallas_src>

<mosaic_0001>
module attributes {stable_mosaic.version = 11 : i64} {
  func.func @kernel(%arg0: i32, %arg1: memref<8x256xf32, #tpu.memory_space<vmem>>, %arg2: memref<256x256xbf16, #tpu.memory_space<vmem>>, %arg3: memref<1x256xf32, #tpu.memory_space<vmem>>, %arg4: memref<256x256xbf16, #tpu.memory_space<vmem>>, %arg5: memref<1x256xf32, #tpu.memory_space<vmem>>, %arg6: memref<256x256xbf16, #tpu.memory_space<vmem>>, %arg7: memref<1x256xf32, #tpu.memory_space<vmem>>, %arg8: memref<8x256xf32, #tpu.memory_space<vmem>>) attributes {dimension_semantics = [#tpu.dimension_semantics<parallel>], iteration_bounds = array<i64: 1>, scalar_prefetch = 0 : i64, scratch_operands = 0 : i64, tpu.core_type = #tpu.core_type<tc>, window_params = [{transform_indices = @transform_0, window_bounds = array<i64: 8, 256>}, {pipeline_mode = #tpu.pipeline_mode<synchronous>, transform_indices = @transform_1, window_bounds = array<i64: 256, 256>}, {pipeline_mode = #tpu.pipeline_mode<synchronous>, transform_indices = @transform_2, window_bounds = array<i64: 1, 256>}, {pipeline_mode = #tpu.pipeline_mode<synchronous>, transform_indices = @transform_3, window_bounds = array<i64: 256, 256>}, {pipeline_mode = #tpu.pipeline_mode<synchronous>, transform_indices = @transform_4, window_bounds = array<i64: 1, 256>}, {pipeline_mode = #tpu.pipeline_mode<synchronous>, transform_indices = @transform_5, window_bounds = array<i64: 256, 256>}, {pipeline_mode = #tpu.pipeline_mode<synchronous>, transform_indices = @transform_6, window_bounds = array<i64: 1, 256>}, {transform_indices = @transform_7, window_bounds = array<i64: 8, 256>}]} {
    %c0 = arith.constant 0 : index
    %c0_0 = arith.constant 0 : index
    %0 = vector.load %arg1[%c0, %c0_0] : memref<8x256xf32, #tpu.memory_space<vmem>>, vector<8x256xf32>
    %c0_1 = arith.constant 0 : index
    %c0_2 = arith.constant 0 : index
    %1 = vector.load %arg2[%c0_1, %c0_2] : memref<256x256xbf16, #tpu.memory_space<vmem>>, vector<256x256xbf16>
    %c0_3 = arith.constant 0 : index
    %c0_4 = arith.constant 0 : index
    %2 = vector.load %arg3[%c0_3, %c0_4] : memref<1x256xf32, #tpu.memory_space<vmem>>, vector<1x256xf32>
    %3 = arith.truncf %0 : vector<8x256xf32> to vector<8x256xbf16>
    %cst = arith.constant dense<0.000000e+00> : vector<8x256xf32>
    %4 = tpu.matmul %3, %1, %cst {dimension_numbers = #tpu.dot_dimension_numbers<[1], [0], [0], [1], [0, 0, 1, 1], [], []>} : vector<8x256xbf16>, vector<256x256xbf16>, vector<8x256xf32> -> vector<8x256xf32>
    %5 = vector.broadcast %2 : vector<1x256xf32> to vector<8x256xf32>
    %6 = arith.addf %4, %5 : vector<8x256xf32>
    %cst_5 = arith.constant 0.000000e+00 : f32
    %7 = vector.broadcast %cst_5 : f32 to vector<8x256xf32>
    %8 = arith.maximumf %6, %7 : vector<8x256xf32>
    %c0_6 = arith.constant 0 : index
    %c0_7 = arith.constant 0 : index
    %9 = vector.load %arg4[%c0_6, %c0_7] : memref<256x256xbf16, #tpu.memory_space<vmem>>, vector<256x256xbf16>
    %c0_8 = arith.constant 0 : index
    %c0_9 = arith.constant 0 : index
    %10 = vector.load %arg5[%c0_8, %c0_9] : memref<1x256xf32, #tpu.memory_space<vmem>>, vector<1x256xf32>
    %11 = arith.truncf %8 : vector<8x256xf32> to vector<8x256xbf16>
    %cst_10 = arith.constant dense<0.000000e+00> : vector<8x256xf32>
    %12 = tpu.matmul %11, %9, %cst_10 {dimension_numbers = #tpu.dot_dimension_numbers<[1], [0], [0], [1], [0, 0, 1, 1], [], []>} : vector<8x256xbf16>, vector<256x256xbf16>, vector<8x256xf32> -> vector<8x256xf32>
    %13 = vector.broadcast %10 : vector<1x256xf32> to vector<8x256xf32>
    %14 = arith.addf %12, %13 : vector<8x256xf32>
    %cst_11 = arith.constant 0.000000e+00 : f32
    %15 = vector.broadcast %cst_11 : f32 to vector<8x256xf32>
    %16 = arith.maximumf %14, %15 : vector<8x256xf32>
    %c0_12 = arith.constant 0 : index
    %c0_13 = arith.constant 0 : index
    %17 = vector.load %arg6[%c0_12, %c0_13] : memref<256x256xbf16, #tpu.memory_space<vmem>>, vector<256x256xbf16>
    %c0_14 = arith.constant 0 : index
    %c0_15 = arith.constant 0 : index
    %18 = vector.load %arg7[%c0_14, %c0_15] : memref<1x256xf32, #tpu.memory_space<vmem>>, vector<1x256xf32>
    %19 = arith.truncf %16 : vector<8x256xf32> to vector<8x256xbf16>
    %cst_16 = arith.constant dense<0.000000e+00> : vector<8x256xf32>
    %20 = tpu.matmul %19, %17, %cst_16 {dimension_numbers = #tpu.dot_dimension_numbers<[1], [0], [0], [1], [0, 0, 1, 1], [], []>} : vector<8x256xbf16>, vector<256x256xbf16>, vector<8x256xf32> -> vector<8x256xf32>
    %21 = vector.broadcast %18 : vector<1x256xf32> to vector<8x256xf32>
    %22 = arith.addf %20, %21 : vector<8x256xf32>
    %c0_17 = arith.constant 0 : index
    %c0_18 = arith.constant 0 : index
    %23 = vector.load %arg8[%c0_17, %c0_18] : memref<8x256xf32, #tpu.memory_space<vmem>>, vector<8x256xf32>
    tpu.vector_store %arg8[%c0_17, %c0_18], %22 {strides = array<i32>} : memref<8x256xf32, #tpu.memory_space<vmem>>, vector<8x256xf32>,
    return
  }
  func.func @transform_0(%arg0: i32) -> (i32, i32) {
    %c0_i32 = arith.constant 0 : i32
    %c0_i32_0 = arith.constant 0 : i32
    return %arg0, %c0_i32 : i32, i32
  }
  func.func @transform_1(%arg0: i32) -> (i32, i32) {
    %c0_i32 = arith.constant 0 : i32
    %c0_i32_0 = arith.constant 0 : i32
    %c0_i32_1 = arith.constant 0 : i32
    return %c0_i32, %c0_i32_0 : i32, i32
  }
  func.func @transform_2(%arg0: i32) -> (i32, i32) {
    %c0_i32 = arith.constant 0 : i32
    %c0_i32_0 = arith.constant 0 : i32
    %c0_i32_1 = arith.constant 0 : i32
    return %c0_i32, %c0_i32_0 : i32, i32
  }
  func.func @transform_3(%arg0: i32) -> (i32, i32) {
    %c0_i32 = arith.constant 0 : i32
    %c0_i32_0 = arith.constant 0 : i32
    %c0_i32_1 = arith.constant 0 : i32
    return %c0_i32, %c0_i32_0 : i32, i32
  }
  func.func @transform_4(%arg0: i32) -> (i32, i32) {
    %c0_i32 = arith.constant 0 : i32
    %c0_i32_0 = arith.constant 0 : i32
    %c0_i32_1 = arith.constant 0 : i32
    return %c0_i32, %c0_i32_0 : i32, i32
  }
  func.func @transform_5(%arg0: i32) -> (i32, i32) {
    %c0_i32 = arith.constant 0 : i32
    %c0_i32_0 = arith.constant 0 : i32
    %c0_i32_1 = arith.constant 0 : i32
    return %c0_i32, %c0_i32_0 : i32, i32
  }
  func.func @transform_6(%arg0: i32) -> (i32, i32) {
    %c0_i32 = arith.constant 0 : i32
    %c0_i32_0 = arith.constant 0 : i32
    %c0_i32_1 = arith.constant 0 : i32
    return %c0_i32, %c0_i32_0 : i32, i32
  }
  func.func @transform_7(%arg0: i32) -> (i32, i32) {
    %c0_i32 = arith.constant 0 : i32
    %c0_i32_0 = arith.constant 0 : i32
    return %arg0, %c0_i32 : i32, i32
  }
}

</mosaic_0001>

<bundles_post_ra>
// kernel: tpu_custom_call.1
= control target key start
LH: loop header
LB: loop body
LE: loop exit
PB: predicated region body
PF: predicated region fallthrough
CT: control target
= control target key end

     0   :  { %12 = vsyncpa [#allocation3], 0  ;;  %s1281_s0 = inlined_call_operand.hbm [shape: f32[8,256], index: 0, kind: input, shape index: {}]   ;;  %s1282_s1 = inlined_call_operand.hbm [shape: bf16[256,256], index: 1, kind: input, shape index: {}]   ;;  %s1283_s2 = inlined_call_operand.vmem [shape: f32[1,256], index: 2, kind: input, shape index: {}]   ;;  %s1284_s3 = inlined_call_operand.hbm [shape: bf16[256,256], index: 3, kind: input, shape index: {}]   ;;  %s1285_s4 = inlined_call_operand.vmem [shape: f32[1,256], index: 4, kind: input, shape index: {}]   ;;  %s1286_s5 = inlined_call_operand.hbm [shape: bf16[256,256], index: 5, kind: input, shape index: {}]   ;;  %s1287_s6 = inlined_call_operand.vmem [shape: f32[1,256], index: 6, kind: input, shape index: {}]   ;;  %s1288_s7 = inlined_call_operand.hbm [shape: f32[8,256], index: 7, kind: output, shape index: {}]  }
   0x1   :  { %13 = vsyncpa [#allocation6], 0 }
   0x2   :  { %14 = vsyncpa [#allocation9], 0 }
   0x3   :  { %15 = vsyncpa [#allocation4], 0  ;;  %s1201_s24 = smov [#allocation5]  }
   0x4   :  { %s31_s25 = sshll.u32 %s1201_s24, 4  ;;  %s32_s25 = int_to_ptr.vmem [resolvable:$true] %s31_s25 }
   0x5   :  { %s1101_s26 = scalar_lea.vmem %s32_s25, 4096  ;;  %p1106_p1 = scmp.lt.s32.totalorder %s32_s25, %s32_s25 }
   0x6   :  { %p1102_p0 = scmp.ne.s32.totalorder %s32_s25, %s1101_s26  ;;  %p1107_p2 = scmp.lt.s32.totalorder %s1101_s26, %s1101_s26 }
   0x8   :  { %p1108_p3 = por %p1107_p2, %p1106_p1 }
   0xa   :  { %p1109_p4 = pnand %p1108_p3, %p1102_p0 }
   0xc   :  { %1112 = shalt.err (!%p1109_p4)
}
   0xd   :  { %s1202_s27 = smov 128   ;;  %s1203_s28 = smov 8  }
   0xe   :  { %37 = dma.hbm_to_vmem [thread:$0]  %s1282_s1, 4096, %s32_s25, [#allocation6], %s1202_s27, %s1202_s27, %s1203_s28  }
   0xf   :  { %s1204_s8 = smov [#allocation2]   ;;  %s1205_s10 = smov [#allocation7]  }
  0x10   :  { %s22_s9 = sshll.u32 %s1204_s8, 4  ;;  %s45_s11 = sshll.u32 %s1205_s10, 4  ;;  %s23_s9 = int_to_ptr.vmem [resolvable:$true] %s22_s9  ;;  %s46_s11 = int_to_ptr.vmem [resolvable:$true] %s45_s11 }
  0x11   :  { %s1121_s12 = scalar_lea.vmem %s23_s9, 256  ;;  %p1126_p6 = scmp.lt.s32.totalorder %s23_s9, %s23_s9 }
  0x12   :  { %p1122_p5 = scmp.ne.s32.totalorder %s23_s9, %s1121_s12  ;;  %p1127_p7 = scmp.lt.s32.totalorder %s1121_s12, %s1121_s12 }
  0x14   :  { %p1128_p8 = por %p1127_p7, %p1126_p6 }
  0x16   :  { %p1129_p9 = pnand %p1128_p8, %p1122_p5 }
  0x18   :  { %1132 = shalt.err (!%p1129_p9)
}
  0x19   :  { %25 = dma.hbm_to_vmem [thread:$0]  %s1281_s0, 256, %s23_s9, [#allocation3]  }
  0x1a   :  { %s1141_s15 = scalar_lea.vmem %s46_s11, 4096  ;;  %p1146_p11 = scmp.lt.s32.totalorder %s46_s11, %s46_s11 }
  0x1b   :  { %p1142_p10 = scmp.ne.s32.totalorder %s46_s11, %s1141_s15  ;;  %p1147_p12 = scmp.lt.s32.totalorder %s1141_s15, %s1141_s15 }
  0x1d   :  { %p1148_p13 = por %p1147_p12, %p1146_p11 }
  0x1f   :  { %p1149_p0 = pnand %p1148_p13, %p1142_p10 }
  0x21   :  { %1152 = shalt.err (!%p1149_p0)
}
  0x22   :  { %51 = dma.hbm_to_vmem [thread:$0]  %s1284_s3, 4096, %s46_s11, [#allocation6], %s1202_s27, %s1202_s27, %s1203_s28  }
  0x23   :  { %s1206_s17 = smov [#allocation8]  }
  0x24   :  { %s59_s18 = sshll.u32 %s1206_s17, 4  ;;  %s60_s18 = int_to_ptr.vmem [resolvable:$true] %s59_s18 }
  0x25   :  { %s1161_s19 = scalar_lea.vmem %s60_s18, 4096  ;;  %p1166_p2 = scmp.lt.s32.totalorder %s60_s18, %s60_s18 }
  0x26   :  { %p1162_p1 = scmp.ne.s32.totalorder %s60_s18, %s1161_s19  ;;  %p1167_p3 = scmp.lt.s32.totalorder %s1161_s19, %s1161_s19 }
  0x28   :  { %p1168_p4 = por %p1167_p3, %p1166_p2 }
  0x2a   :  { %p1169_p5 = pnand %p1168_p4, %p1162_p1 }
  0x2c   :  { %1172 = shalt.err (!%p1169_p5)
}
  0x2d   :  { %65 = dma.hbm_to_vmem [thread:$0]  %s1286_s5, 4096, %s60_s18, [#allocation9], %s1202_s27, %s1202_s27, %s1203_s28  }
  0x2e   :  { %1193 = dma.done.wait [#allocation3], 256  }
  0x2f   :  { %1194 = vsyncadd [#allocation3], 4294967040 }
  0x30   :  { %1195 = dma.done.wait [#allocation6], 8192  }
  0x31   :  { %1196 = vsyncadd [#allocation6], 4294959104 }
  0x32   :  { %1197 = dma.done.wait [#allocation9], 4096  }
  0x33   :  { %1198 = vsyncadd [#allocation9], 4294963200  ;;  %v949_v0 = vld [vmem:[#allocation5 + $0x74] ss:$8 sps:$4 sm:$0xff]   ;;  %v951_v1 = vld [vmem:[#allocation5 + $0x70] ss:$8 sps:$4 sm:$0xff]  }
  0x34   :  { %288 = vmatprep.subr.bf16.mxu0 %v949_v0  ;;  %v952_v2 = vld [vmem:[#allocation5 + $0x64] ss:$8 sps:$4 sm:$0xff]   ;;  %v954_v3 = vld [vmem:[#allocation5 + $0x60] ss:$8 sps:$4 sm:$0xff]   ;;  %v955_v4 = vld [vmem:[#allocation5 + $0x54] ss:$8 sps:$4 sm:$0xff]  }
  0x35   :  { %289 = vmatpush1.bf16.msra.mxu0 %v951_v1  ;;  %v957_v5 = vld [vmem:[#allocation5 + $0x50] ss:$8 sps:$4 sm:$0xff]   ;;  %v958_v6 = vld [vmem:[#allocation5 + $0x44] ss:$8 sps:$4 sm:$0xff]   ;;  %v960_v7 = vld [vmem:[#allocation5 + $0x40] ss:$8 sps:$4 sm:$0xff]  }
  0x36   :  { %290 = vmatprep.subr.bf16.mxu0 %v952_v2  ;;  %v961_v8 = vld [vmem:[#allocation5 + $0x34] ss:$8 sps:$4 sm:$0xff]   ;;  %v963_v9 = vld [vmem:[#allocation5 + $0x30] ss:$8 sps:$4 sm:$0xff]   ;;  %v964_v10 = vld [vmem:[#allocation5 + $0x24] ss:$8 sps:$4 sm:$0xff]  }
  0x37   :  { %v966_v11 = vld [vmem:[#allocation5 + $0x20] ss:$8 sps:$4 sm:$0xff]   ;;  %v967_v12 = vld [vmem:[#allocation5 + $0x14] ss:$8 sps:$4 sm:$0xff]   ;;  %v969_v13 = vld [vmem:[#allocation5 + $0x10] ss:$8 sps:$4 sm:$0xff]  }
  0x38   :  { %v81_v14 = vld [vmem:[#allocation2 + $0x8] sm:$0xff]  ;;  %v970_v18 = vld [vmem:[#allocation5 + $0x4] ss:$8 sps:$4 sm:$0xff]   ;;  %v972_v20 = vld [vmem:[#allocation5] ss:$8 sps:$4 sm:$0xff]  }
  0x39   :  { %291 = vmatpush1.bf16.msra.mxu0 %v954_v3  ;;  %v116_v15 = vpack.c.bf16 %v81_v14, %v81_v14  ;;  %v997_v16 = vld [vmem:[#allocation7 + $0x74] ss:$8 sps:$4 sm:$0xff]   ;;  %v999_v17 = vld [vmem:[#allocation7 + $0x70] ss:$8 sps:$4 sm:$0xff]   ;;  %v1000_v19 = vld [vmem:[#allocation7 + $0x64] ss:$8 sps:$4 sm:$0xff]  }
  0x3a   :  { %292 = vmatprep.subr.bf16.mxu0 %v955_v4  ;;  %537 = vmatprep.subr.bf16.mxu1 %v997_v16  ;;  %v1002_v21 = vld [vmem:[#allocation7 + $0x60] ss:$8 sps:$4 sm:$0xff]   ;;  %v1003_v22 = vld [vmem:[#allocation7 + $0x54] ss:$8 sps:$4 sm:$0xff]   ;;  %v975_v24 = vld [vmem:[#allocation5 + $0xf0] ss:$8 sps:$4 sm:$0xff]  }
  0x3b   :  { %320 = vmatprep.mubr.bf16.mxu0 %v116_v15  ;;  %538 = vmatpush1.bf16.msra.mxu1 %v999_v17  ;;  %v973_v23 = vld [vmem:[#allocation5 + $0xf4] ss:$8 sps:$4 sm:$0xff]   ;;  %v1005_v25 = vld [vmem:[#allocation7 + $0x50] ss:$8 sps:$4 sm:$0xff]   ;;  %v1006_v26 = vld [vmem:[#allocation7 + $0x44] ss:$8 sps:$4 sm:$0xff]  }
  0x3c   :  { %539 = vmatprep.subr.bf16.mxu1 %v1000_v19  ;;  %v976_v27 = vld [vmem:[#allocation5 + $0xe4] ss:$8 sps:$4 sm:$0xff]   ;;  %v978_v28 = vld [vmem:[#allocation5 + $0xe0] ss:$8 sps:$4 sm:$0xff]   ;;  %v1009_v30 = vld [vmem:[#allocation7 + $0x34] ss:$8 sps:$4 sm:$0xff]  }
  0x3d   :  { %293 = vmatpush1.bf16.msra.mxu0 %v957_v5  ;;  %v1008_v29 = vld [vmem:[#allocation7 + $0x40] ss:$8 sps:$4 sm:$0xff]   ;;  %v979_v31 = vld [vmem:[#allocation5 + $0xd4] ss:$8 sps:$4 sm:$0xff]   ;;  %v981_v32 = vld [vmem:[#allocation5 + $0xd0] ss:$8 sps:$4 sm:$0xff]  }
  0x3e   :  { %294 = vmatprep.subr.bf16.mxu0 %v958_v6  ;;  %v1011_v33 = vld [vmem:[#allocation7 + $0x30] ss:$8 sps:$4 sm:$0xff]   ;;  %v1012_v34 = vld [vmem:[#allocation7 + $0x24] ss:$8 sps:$4 sm:$0xff]   ;;  %v1014_v36 = vld [vmem:[#allocation7 + $0x20] ss:$8 sps:$4 sm:$0xff]  }
  0x3f   :  { %540 = vmatpush1.bf16.msra.mxu1 %v1002_v21  ;;  %v982_v35 = vld [vmem:[#allocation5 + $0xc4] ss:$8 sps:$4 sm:$0xff]   ;;  %v984_v37 = vld [vmem:[#allocation5 + $0xc0] ss:$8 sps:$4 sm:$0xff]   ;;  %v1015_v38 = vld [vmem:[#allocation7 + $0x14] ss:$8 sps:$4 sm:$0xff]  }
  0x40   :  { %541 = vmatprep.subr.bf16.mxu1 %v1003_v22  ;;  %v985_v39 = vld [vmem:[#allocation5 + $0xb4] ss:$8 sps:$4 sm:$0xff]   ;;  %v1017_v40 = vld [vmem:[#allocation7 + $0x10] ss:$8 sps:$4 sm:$0xff]   ;;  %v1018_v42 = vld [vmem:[#allocation7 + $0x4] ss:$8 sps:$4 sm:$0xff]  }
  0x41   :  { %295 = vmatpush1.bf16.msra.mxu0 %v960_v7  ;;  %v987_v41 = vld [vmem:[#allocation5 + $0xb0] ss:$8 sps:$4 sm:$0xff]   ;;  %v988_v43 = vld [vmem:[#allocation5 + $0xa4] ss:$8 sps:$4 sm:$0xff]   ;;  %v1020_v44 = vld [vmem:[#allocation7] ss:$8 sps:$4 sm:$0xff]  }
  0x42   :  { %296 = vmatprep.subr.bf16.mxu0 %v961_v8  ;;  %v990_v45 = vld [vmem:[#allocation5 + $0xa0] ss:$8 sps:$4 sm:$0xff]   ;;  %v1021_v46 = vld [vmem:[#allocation7 + $0xf4] ss:$8 sps:$4 sm:$0xff]   ;;  %v1023_v48 = vld [vmem:[#allocation7 + $0xf0] ss:$8 sps:$4 sm:$0xff]  }
  0x43   :  { %542 = vmatpush1.bf16.msra.mxu1 %v1005_v25  ;;  %v991_v47 = vld [vmem:[#allocation5 + $0x94] ss:$8 sps:$4 sm:$0xff]   ;;  %v993_v49 = vld [vmem:[#allocation5 + $0x90] ss:$8 sps:$4 sm:$0xff]   ;;  %v1024_v50 = vld [vmem:[#allocation7 + $0xe4] ss:$8 sps:$4 sm:$0xff]  }
  0x44   :  { %543 = vmatprep.subr.bf16.mxu1 %v1006_v26  ;;  %v994_v51 = vld [vmem:[#allocation5 + $0x84] ss:$8 sps:$4 sm:$0xff]   ;;  %v1026_v52 = vld [vmem:[#allocation7 + $0xe0] ss:$8 sps:$4 sm:$0xff]   ;;  %v80_v54 = vld [vmem:[#allocation2] sm:$0xff] }
  0x45   :  { %297 = vmatpush1.bf16.msra.mxu0 %v963_v9  ;;  %v996_v53 = vld [vmem:[#allocation5 + $0x80] ss:$8 sps:$4 sm:$0xff]   ;;  %v1027_v55 = vld [vmem:[#allocation7 + $0xd4] ss:$8 sps:$4 sm:$0xff]   ;;  %v115_v56 = vpack.c.bf16 %v80_v54, %v80_v54  ;;  %v1029_v57 = vld [vmem:[#allocation7 + $0xd0] ss:$8 sps:$4 sm:$0xff]  }
  0x46   :  { %298 = vmatprep.subr.bf16.mxu0 %v964_v10  ;;  %v1030_v58 = vld [vmem:[#allocation7 + $0xc4] ss:$8 sps:$4 sm:$0xff]   ;;  %v1032_v59 = vld [vmem:[#allocation7 + $0xc0] ss:$8 sps:$4 sm:$0xff]   ;;  %v1033_v60 = vld [vmem:[#allocation7 + $0xb4] ss:$8 sps:$4 sm:$0xff]  }
  0x47   :  { %544 = vmatpush1.bf16.msra.mxu1 %v1008_v29  ;;  %v1035_v61 = vld [vmem:[#allocation7 + $0xb0] ss:$8 sps:$4 sm:$0xff]   ;;  %v1036_v62 = vld [vmem:[#allocation7 + $0xa4] ss:$8 sps:$4 sm:$0xff]   ;;  %v1038_v63 = vld [vmem:[#allocation7 + $0xa0] ss:$8 sps:$4 sm:$0xff]  }
  0x48   :  { %545 = vmatprep.subr.bf16.mxu1 %v1009_v30  ;;  %v1039_v0 = vld [vmem:[#allocation7 + $0x94] ss:$8 sps:$4 sm:$0xff]   ;;  %v1041_v1 = vld [vmem:[#allocation7 + $0x90] ss:$8 sps:$4 sm:$0xff]   ;;  %v1042_v2 = vld [vmem:[#allocation7 + $0x84] ss:$8 sps:$4 sm:$0xff]  }
  0x49   :  { %299 = vmatpush1.bf16.msra.mxu0 %v966_v11  ;;  %v1044_v3 = vld [vmem:[#allocation7 + $0x80] ss:$8 sps:$4 sm:$0xff]   ;;  %v1045_v4 = vld [vmem:[#allocation8 + $0x70] ss:$8 sps:$4 sm:$0xff]   ;;  %v1047_v5 = vld [vmem:[#allocation8 + $0x74] ss:$8 sps:$4 sm:$0xff]  }
  0x4a   :  { %300 = vmatprep.subr.bf16.mxu0 %v967_v12  ;;  %v1050_v6 = vld [vmem:[#allocation8 + $0x64] ss:$8 sps:$4 sm:$0xff]   ;;  %v1048_v7 = vld [vmem:[#allocation8 + $0x60] ss:$8 sps:$4 sm:$0xff]   ;;  %v1053_v8 = vld [vmem:[#allocation8 + $0x54] ss:$8 sps:$4 sm:$0xff]  }
  0x4b   :  { %546 = vmatpush1.bf16.msra.mxu1 %v1011_v33  ;;  %v1051_v9 = vld [vmem:[#allocation8 + $0x50] ss:$8 sps:$4 sm:$0xff]   ;;  %v1056_v10 = vld [vmem:[#allocation8 + $0x44] ss:$8 sps:$4 sm:$0xff]   ;;  %v1054_v11 = vld [vmem:[#allocation8 + $0x40] ss:$8 sps:$4 sm:$0xff]  }
  0x4c   :  { %547 = vmatprep.subr.bf16.mxu1 %v1012_v34  ;;  %v1059_v12 = vld [vmem:[#allocation8 + $0x34] ss:$8 sps:$4 sm:$0xff]   ;;  %v1062_v14 = vld [vmem:[#allocation8 + $0x24] ss:$8 sps:$4 sm:$0xff]   ;;  %v1060_v15 = vld [vmem:[#allocation8 + $0x20] ss:$8 sps:$4 sm:$0xff]  }
  0x4d   :  { %301 = vmatpush1.bf16.msra.mxu0 %v969_v13  ;;  %v1057_v13 = vld [vmem:[#allocation8 + $0x30] ss:$8 sps:$4 sm:$0xff]   ;;  %v1065_v16 = vld [vmem:[#allocation8 + $0x14] ss:$8 sps:$4 sm:$0xff]   ;;  %v1066_v19 = vld [vmem:[#allocation8] ss:$8 sps:$4 sm:$0xff]  }
  0x4e   :  { %302 = vmatprep.subr.bf16.mxu0 %v970_v18  ;;  %v1063_v17 = vld [vmem:[#allocation8 + $0x10] ss:$8 sps:$4 sm:$0xff]   ;;  %v1068_v18 = vld [vmem:[#allocation8 + $0x4] ss:$8 sps:$4 sm:$0xff]  }
  0x4f   :  { %548 = vmatpush1.bf16.msra.mxu1 %v1014_v36  ;;  %v1069_v21 = vld [vmem:[#allocation8 + $0xf0] ss:$8 sps:$4 sm:$0xff]   ;;  %v1074_v22 = vld [vmem:[#allocation8 + $0xe4] ss:$8 sps:$4 sm:$0xff]  }
  0x50   :  { %549 = vmatprep.subr.bf16.mxu1 %v1015_v38  ;;  %v1075_v25 = vld [vmem:[#allocation8 + $0xd0] ss:$8 sps:$4 sm:$0xff]   ;;  %v1080_v26 = vld [vmem:[#allocation8 + $0xc4] ss:$8 sps:$4 sm:$0xff]  }
  0x51   :  { %303 = vmatpush1.bf16.msra.mxu0 %v972_v20  ;;  %v1071_v20 = vld [vmem:[#allocation8 + $0xf4] ss:$8 sps:$4 sm:$0xff]   ;;  %v1081_v29 = vld [vmem:[#allocation8 + $0xb0] ss:$8 sps:$4 sm:$0xff]   ;;  %v1086_v30 = vld [vmem:[#allocation8 + $0xa4] ss:$8 sps:$4 sm:$0xff]  }
  0x52   :  { %304 = vmatprep.subr.bf16.mxu0 %v973_v23  ;;  %v1072_v23 = vld [vmem:[#allocation8 + $0xe0] ss:$8 sps:$4 sm:$0xff]  }
  0x53   :  { %550 = vmatpush1.bf16.msra.mxu1 %v1017_v40 }
  0x54   :  { %551 = vmatprep.subr.bf16.mxu1 %v1018_v42 }
  0x55   :  { %305 = vmatpush2.bf16.msra.mxu0 %v975_v24  ;;  %v1077_v24 = vld [vmem:[#allocation8 + $0xd4] ss:$8 sps:$4 sm:$0xff]  }
  0x56   :  { %306 = vmatprep.subr.bf16.mxu0 %v976_v27  ;;  %v1078_v27 = vld [vmem:[#allocation8 + $0xc0] ss:$8 sps:$4 sm:$0xff]  }
  0x57   :  { %552 = vmatpush1.bf16.msra.mxu1 %v1020_v44 }
  0x58   :  { %553 = vmatprep.subr.bf16.mxu1 %v1021_v46 }
  0x59   :  { %307 = vmatpush2.bf16.msra.mxu0 %v978_v28  ;;  %v1083_v28 = vld [vmem:[#allocation8 + $0xb4] ss:$8 sps:$4 sm:$0xff]  }
  0x5a   :  { %308 = vmatprep.subr.bf16.mxu0 %v979_v31  ;;  %v1084_v31 = vld [vmem:[#allocation8 + $0xa0] ss:$8 sps:$4 sm:$0xff]  }
  0x5b   :  { %554 = vmatpush2.bf16.msra.mxu1 %v1023_v48 }
  0x5c   :  { %555 = vmatprep.subr.bf16.mxu1 %v1024_v50  ;;  %v1087_v50 = vld [vmem:[#allocation8 + $0x90] ss:$8 sps:$4 sm:$0xff]  }
  0x5d   :  { %309 = vmatpush2.bf16.msra.mxu0 %v981_v32  ;;  %v118_v32 = vlaneseq }
  0x5e   :  { %310 = vmatprep.subr.bf16.mxu0 %v982_v35  ;;  %v114_v35 = vld [vmem:[%s1283_s2] sm:$0x3] }
  0x5f   :  { %556 = vmatpush2.bf16.msra.mxu1 %v1026_v52  ;;  %v119_v33 = vshrl.u32 %v118_v32, 7  ;;  %v1090_v52 = vld [vmem:[#allocation8 + $0x80] ss:$8 sps:$4 sm:$0xff]  }
  0x60   :  { %557 = vmatprep.subr.bf16.mxu1 %v1027_v55 }
  0x61   :  { %311 = vmatpush2.bf16.msra.mxu0 %v984_v37  ;;  %v120_v34 = vsub.s32 0, %v119_v33  ;;  %v124_v36 = vsub.s32 1, %v119_v33 }
  0x62   :  { %312 = vmatprep.subr.bf16.mxu0 %v985_v39 }
  0x63   :  { %558 = vmatpush2.bf16.msra.mxu1 %v1029_v57  ;;  %v121_v37 = vrot.slane %v114_v35, %v120_v34  ;;  %v125_v38 = vrot.slane %v114_v35, %v124_v36 }
  0x64   :  { %559 = vmatprep.subr.bf16.mxu1 %v1030_v58 }
  0x65   :  { %313 = vmatpush2.bf16.msra.mxu0 %v987_v41 }
  0x66   :  { %314 = vmatprep.subr.bf16.mxu0 %v988_v43 }
  0x67   :  { %560 = vmatpush2.bf16.msra.mxu1 %v1032_v59 }
  0x68   :  { %561 = vmatprep.subr.bf16.mxu1 %v1033_v60 }
  0x69   :  { %315 = vmatpush2.bf16.msra.mxu0 %v990_v45 }
  0x6a   :  { %316 = vmatprep.subr.bf16.mxu0 %v991_v47 }
  0x6b   :  { %562 = vmatpush2.bf16.msra.mxu1 %v1035_v61 }
  0x6c   :  { %563 = vmatprep.subr.bf16.mxu1 %v1036_v62 }
  0x6d   :  { %317 = vmatpush2.bf16.msra.mxu0 %v993_v49  ;;  %v1089_v49 = vld [vmem:[#allocation8 + $0x94] ss:$8 sps:$4 sm:$0xff]  }
  0x6e   :  { %318 = vmatprep.subr.bf16.mxu0 %v994_v51  ;;  %v1092_v51 = vld [vmem:[#allocation8 + $0x84] ss:$8 sps:$4 sm:$0xff]  }
  0x6f   :  { %564 = vmatpush2.bf16.msra.mxu1 %v1038_v63 }
  0x70   :  { %565 = vmatprep.subr.bf16.mxu1 %v1039_v0 }
  0x71   :  { %319 = vmatpush2.bf16.msra.mxu0 %v996_v53  ;;  %v363_v53 = vld [vmem:[%s1285_s4] sm:$0x3]  ;;  %s1207_s4 = smov [#allocation10]  }
  0x72   :  { %786 = vmatprep.subr.bf16.mxu0 %v1047_v5  ;;  %v370_v54 = vrot.slane %v363_v53, %v120_v34  ;;  %v374_v55 = vrot.slane %v363_v53, %v124_v36  ;;  %s835_s24 = sshll.u32 %s1207_s4, 4  ;;  %s836_s24 = int_to_ptr.vmem [resolvable:$true] %s835_s24 }
  0x73   :  { %566 = vmatpush2.bf16.msra.mxu1 %v1041_v1  ;;  %s1173_s25 = scalar_lea.vmem %s836_s24, 256  ;;  %p1178_p7 = scmp.lt.s32.totalorder %s836_s24, %s836_s24 }
  0x74   :  { %321 = vmatmul.mubr.bf16.vlgmr.msra.gmra.mxu0 %v115_v56  ;;  %567 = vmatprep.subr.bf16.mxu1 %v1042_v2  ;;  %v612_v2 = vld [vmem:[%s1287_s6] sm:$0x3]  ;;  %p1174_p6 = scmp.ne.s32.totalorder %s836_s24, %s1173_s25  ;;  %p1179_p8 = scmp.lt.s32.totalorder %s1173_s25, %s1173_s25 }
  0x75   :  { %787 = vmatpush1.bf16.msra.mxu0 %v1045_v4  ;;  %v623_v4 = vrot.slane %v612_v2, %v124_v36 }
  0x76   :  { %788 = vmatprep.subr.bf16.mxu0 %v1050_v6  ;;  %p1180_p9 = por %p1179_p8, %p1178_p7 }
  0x77   :  { %568 = vmatpush2.bf16.msra.mxu1 %v1044_v3  ;;  %v619_v3 = vrot.slane %v612_v2, %v120_v34 }
  0x78   :  { %p1181_p10 = pnand %p1180_p9, %p1174_p6 }
  0x79   :  { %789 = vmatpush1.bf16.msra.mxu0 %v1048_v7 }
  0x7a   :  { %790 = vmatprep.subr.bf16.mxu0 %v1053_v8 }
  0x7d   :  { %791 = vmatpush1.bf16.msra.mxu0 %v1051_v9 }
  0x7e   :  { %792 = vmatprep.subr.bf16.mxu0 %v1056_v10 }
  0x81   :  { %793 = vmatpush1.bf16.msra.mxu0 %v1054_v11 }
  0x82   :  { %794 = vmatprep.subr.bf16.mxu0 %v1059_v12 }
  0x85   :  { %795 = vmatpush1.bf16.msra.mxu0 %v1057_v13 }
  0x86   :  { %796 = vmatprep.subr.bf16.mxu0 %v1062_v14 }
  0x89   :  { %797 = vmatpush1.bf16.msra.mxu0 %v1060_v15 }
  0x8a   :  { %798 = vmatprep.subr.bf16.mxu0 %v1065_v16 }
  0x8d   :  { %799 = vmatpush1.bf16.msra.mxu0 %v1063_v17 }
  0x8e   :  { %800 = vmatprep.subr.bf16.mxu0 %v1068_v18 }
  0x91   :  { %801 = vmatpush1.bf16.msra.mxu0 %v1066_v19 }
  0x92   :  { %802 = vmatprep.subr.bf16.mxu0 %v1071_v20 }
  0x95   :  { %803 = vmatpush2.bf16.msra.mxu0 %v1069_v21 }
  0x96   :  { %804 = vmatprep.subr.bf16.mxu0 %v1074_v22 }
  0x99   :  { %805 = vmatpush2.bf16.msra.mxu0 %v1072_v23 }
  0x9a   :  { %806 = vmatprep.subr.bf16.mxu0 %v1077_v24 }
  0x9d   :  { %807 = vmatpush2.bf16.msra.mxu0 %v1075_v25 }
  0x9e   :  { %808 = vmatprep.subr.bf16.mxu0 %v1080_v26 }
  0xa1   :  { %809 = vmatpush2.bf16.msra.mxu0 %v1078_v27 }
  0xa2   :  { %810 = vmatprep.subr.bf16.mxu0 %v1083_v28 }
  0xa5   :  { %811 = vmatpush2.bf16.msra.mxu0 %v1081_v29 }
  0xa6   :  { %812 = vmatprep.subr.bf16.mxu0 %v1086_v30 }
  0xa9   :  { %813 = vmatpush2.bf16.msra.mxu0 %v1084_v31 }
  0xaa   :  { %814 = vmatprep.subr.bf16.mxu0 %v1089_v49 }
  0xad   :  { %815 = vmatpush2.bf16.msra.mxu0 %v1087_v50 }
  0xae   :  { %816 = vmatprep.subr.bf16.mxu0 %v1092_v51 }
  0xb1   :  { %817 = vmatpush2.bf16.msra.mxu0 %v1090_v52 }
 0x134   :  { %v322_v39 = vpop.f32.mrf.mxu0 }
 0x135   :  { %v323_v40 = vadd.f32 %v322_v39, %v121_v37 }
 0x136   :  { %v324_v41 = vpop.f32.mrf.mxu0 }
 0x137   :  { %v325_v42 = vadd.f32 %v324_v41, %v125_v38  ;;  %v329_v43 = vmax.f32 %v323_v40, 0.0 }
 0x138   :  { %v326_v44 = vpop.f32.mrf.mxu0 }
 0x139   :  { %v330_v45 = vmax.f32 %v325_v42, 0.0  ;;  %v364_v48 = vpack.c.bf16 %v329_v43, %v329_v43 }
 0x13a   :  { %v327_v46 = vpop.f32.mrf.mxu0 }
 0x13b   :  { %v365_v47 = vpack.c.bf16 %v330_v45, %v330_v45 }
 0x13d   :  { %569 = vmatprep.mubr.bf16.mxu1 %v365_v47 }
 0x13e   :  { %570 = vmatmul.mubr.bf16.vlgmr.msra.gmra.mxu1 %v364_v48 }
 0x1fe   :  { %v571_v56 = vpop.f32.mrf.mxu1 }
 0x1ff   :  { %v572_v57 = vadd.f32 %v571_v56, %v370_v54 }
 0x200   :  { %v573_v58 = vpop.f32.mrf.mxu1 }
 0x201   :  { %v574_v59 = vadd.f32 %v573_v58, %v374_v55  ;;  %v578_v60 = vmax.f32 %v572_v57, 0.0 }
 0x202   :  { %v575_v61 = vpop.f32.mrf.mxu1 }
 0x203   :  { %v579_v62 = vmax.f32 %v574_v59, 0.0  ;;  %v613_v1 = vpack.c.bf16 %v578_v60, %v578_v60 }
 0x204   :  { %v576_v63 = vpop.f32.mrf.mxu1 }
 0x205   :  { %v614_v0 = vpack.c.bf16 %v579_v62, %v579_v62 }
 0x207   :  { %818 = vmatprep.mubr.bf16.mxu0 %v614_v0 }
 0x208   :  { %819 = vmatmul.mubr.bf16.vlgmr.msra.gmra.mxu0 %v613_v1 }
 0x2c8   :  { %v820_v5 = vpop.f32.mrf.mxu0 }
 0x2c9   :  { %v821_v6 = vadd.f32 %v820_v5, %v619_v3 }
 0x2ca   :  { %v822_v7 = vpop.f32.mrf.mxu0 }
 0x2cb   :  { %827 = vst [vmem:[#allocation10] sm:$0xff] %v821_v6  ;;  %v823_v8 = vadd.f32 %v822_v7, %v623_v4 }
 0x2cc   :  { %v824_v9 = vpop.f32.mrf.mxu0 }
 0x2cd   :  { %828 = vst [vmem:[#allocation10 + $0x8] sm:$0xff] %v823_v8 }
 0x2ce   :  { %v825_v10 = vpop.f32.mrf.mxu0 }
 0x2cf   :  { %1184 = shalt.err (!%p1181_p10)
}
 0x2d0   :  { %838 = dma.vmem_to_hbm [thread:$0]  %s836_s24, 256, %s1288_s7, [#allocation4]  }
 0x2d1   :  { %1199 = dma.done.wait [#allocation4], 256  }
 0x2d2   :  { %1200 = vsyncadd [#allocation4], 4294967040 }
 0x2d3   :  { %842 = vsyncpa [#allocation3], 1 }
 0x2d4   :  { %843 = vsyncpa [#allocation6], 1 }
 0x2d5   :  { %844 = vsyncpa [#allocation9], 1 }
 0x2d6   :  { %845 = vsyncpa [#allocation4], 1 }

</bundles_post_ra>
